<compile_context>
chip_gen: v5e
topology: v5e:2x2
jax: 0.10.0
libtpu: 0.0.40
codegen_flags: <defaults>
</compile_context>

<pallas_src>
import functools

import jax
import jax.numpy as jnp
from jax import lax
from jax.experimental import pallas as pl
from jax.experimental.pallas import tpu as pltpu

_LANE = 128
_MIB = 1024 * 1024


def _round_up(x, m):
    return (x + m - 1) // m * m


def _round_down(x, m):
    return (x // m) * m


def _tpu_generation():
    """Best-effort device introspection -> (is_v7x_like, tensorcores_per_device)."""
    try:
        kind = jax.devices()[0].device_kind.lower()
    except Exception:  # pragma: no cover - defensive
        kind = ""
    is_v7 = "7" in kind                                   # "TPU7x"
    # v4 / v5p / v7x expose two TensorCores worth of grid parallelism per device.
    cores = 2 if (is_v7 or "v4" in kind or "v5p" in kind) else 1
    return is_v7, cores


# --------------------------------------------------------------------------------------
# Primary (fused, lane-dense) kernel
# --------------------------------------------------------------------------------------
def _weighted_ce_fused_kernel(pred_ref, labels_ref, weights_ref, out_ref, acc_ref, *,
                              n_total):
    # pred_ref:    (T, C)   native dtype (f32/bf16), rows along sublanes.
    # labels_ref:  (1, T)   int32, lane-dense.
    # weights_ref: (1, T)   float,  lane-dense.
    # out_ref:     (1, 1)   f32 SMEM (per-split partial sum, written once).
    # acc_ref:     (1, 1)   f32 VMEM scratch (one VPU add per tile, no SMEM RMW).
    s = pl.program_id(0)                     # split across TensorCores (v7x)
    i = pl.program_id(1)                     # reduction tile within the split
    tiles_per_split = pl.num_programs(1)

    @pl.when(i == 0)
    def _init():
        acc_ref[...] = jnp.zeros_like(acc_ref)

    pred = pred_ref[...]
    tn, c = pred.shape

    # Unclamped logical tile id -> global row ids.  Tail rows of the last real tile and
    # fully clamped duplicate tiles (grid padding) must contribute exactly 0.
    tile_idx = s * tiles_per_split + i
    base = tile_idx * tn
    valid_rows = (base + lax.broadcasted_iota(jnp.int32, (tn, c), 0)) < n_total   # (T,C)
    valid_lanes = (base + lax.broadcasted_iota(jnp.int32, (1, tn), 1)) < n_total  # (1,T)

    # Sanitize out-of-range rows *before* exp/log/MXU so garbage HBM bits (possibly
    # Inf/NaN) can never poison the masked sums (0 * NaN == NaN inside a matmul).
    pred = jnp.where(valid_rows, pred, jnp.zeros_like(pred))

    # Row max in the native dtype (exact for bf16), single f32 upcast for the exp/log.
    m = jnp.max(pred, axis=-1, keepdims=True).astype(jnp.float32)                 # (T,1)
    p32 = pred.astype(jnp.float32)
    lse = m + jnp.log(jnp.sum(jnp.exp(p32 - m), axis=-1, keepdims=True))          # (T,1)
    nlp = lse - p32                                                               # (T,C) = -log_softmax
    # TODO(synk): for C << 128, pack floor(128/C) rows per lane row to stop the EUP
    # doing padded-lane exp work (mainly pays off on v7x).

    # Lane-major masked weights and a (C, T) weighted one-hot of the labels --
    # pure sublane broadcasts of lane-dense data, no transposes / relayouts.
    w_m = jnp.where(valid_lanes, weights_ref[...].astype(jnp.float32), 0.0)       # (1,T)
    class_ids = lax.broadcasted_iota(jnp.int32, (c, tn), 0)
    wh = jnp.where(class_ids == labels_ref[...], w_m, 0.0)                        # (C,T)

    # sum_r w_r * nlp[r, labels_r] == trace(wh @ nlp): the big contraction over rows
    # runs on the otherwise idle MXU instead of a VPU/XLU reduce chain.
    prods = jnp.dot(wh, nlp, preferred_element_type=jnp.float32,
                    precision=lax.Precision.HIGHEST)                              # (C,C)
    diag = (lax.broadcasted_iota(jnp.int32, prods.shape, 0) ==
            lax.broadcasted_iota(jnp.int32, prods.shape, 1))
    acc_ref[...] += jnp.sum(jnp.where(diag, prods, 0.0), keepdims=True)           # (1,1)

    @pl.when(i == tiles_per_split - 1)
    def _finalize():
        out_ref[0, 0] = acc_ref[0, 0]


def _fused_plan(n, c, pred_itemsize, tile_override=None):
    """Pick tile_n (multiple of 128) and vmem_limit from the *padded* footprint."""
    is_v7, _ = _tpu_generation()
    c_lanes = _round_up(max(c, 1), _LANE)       # pred last dim padded to 128 lanes
    c_subs = _round_up(max(c, 1), 8)            # (C, T) operands padded to 8 sublanes
    # Padded VMEM bytes per tile row:
    per_row = (2 * (c_lanes * pred_itemsize + 64)   # double-buffered pred + (1,t) labels/weights
               + 3 * c_lanes * 4                    # masked f32 copy, exp, -log-softmax temps
               + 2 * c_subs * 4                     # (C,t) one-hot / weighted one-hot
               + 3 * _LANE * 4)                     # (t,1) row max / sum / lse (lane padded)
    if tile_override is None:
        budget = (40 if is_v7 else 72) * _MIB       # total working set target
        pred_cap = (8 if is_v7 else 12) * _MIB      # per-buffer predictions target
        tile = min(budget // per_row, pred_cap // max(c_lanes * pred_itemsize, 1))
        tile = max(_LANE, _round_down(int(tile), _LANE))
    else:
        tile = max(_LANE, _round_down(int(tile_override), _LANE))
    if tile >= n:
        tile = n                                    # full-extent block: no divisibility needed
    cap = (56 if is_v7 else 110) * _MIB             # stay well under physical VMEM
    vmem_limit = int(max(32 * _MIB, min(cap, int(1.4 * per_row * tile) + 2 * _MIB)))
    return tile, vmem_limit


def _weighted_loss_fused(predictions, labels, weights, tile_n=None, _force_splits=None):
    n, c = predictions.shape
    labels_lm = labels.reshape(1, n).astype(jnp.int32)     # lane-dense aux operands
    weights_lm = weights.reshape(1, n)

    tile, vmem_limit = _fused_plan(n, c, predictions.dtype.itemsize, tile_n)
    _, cores = _tpu_generation()
    num_tiles = pl.cdiv(n, tile)
    num_splits = int(_force_splits) if _force_splits else max(1, min(cores, num_tiles))
    num_splits = max(1, min(num_splits, num_tiles))
    tiles_per_split = pl.cdiv(num_tiles, num_splits)

    def tile_map(s, i):
        # Clamp so no block index runs past the array; the kernel masks duplicate
        # tiles to zero via the (unclamped) global row-id predicate.
        return jnp.minimum(s * tiles_per_split + i, num_tiles - 1)

    partials = pl.pallas_call(
        functools.partial(_weighted_ce_fused_kernel, n_total=n),
        out_shape=jax.ShapeDtypeStruct((num_splits, 1), jnp.float32),
        grid_spec=pltpu.PrefetchScalarGridSpec(
            num_scalar_prefetch=0,
            grid=(num_splits, tiles_per_split),
            in_specs=[
                pl.BlockSpec((tile, c), lambda s, i: (tile_map(s, i), 0)),
                pl.BlockSpec((1, tile), lambda s, i: (0, tile_map(s, i))),
                pl.BlockSpec((1, tile), lambda s, i: (0, tile_map(s, i))),
            ],
            out_specs=pl.BlockSpec((1, 1), lambda s, i: (s, 0),
                                   memory_space=pltpu.MemorySpace.SMEM),
            scratch_shapes=[pltpu.VMEM((1, 1), jnp.float32)],
        ),
        compiler_params=pltpu.CompilerParams(
            # TODO(synk): if profiling on v7x shows the split axis is not sharded across
            # both TensorCores, switch the first entry to pltpu.CORE_PARALLEL.
            dimension_semantics=("parallel", "arbitrary"),
            vmem_limit_bytes=vmem_limit,
        ),
    )(predictions, labels_lm, weights_lm)
    # Cross-split combine + mean over the batch dim stay out of the kernel loop.
    return jnp.sum(partials) / jnp.float32(n)


# --------------------------------------------------------------------------------------
# Fallback kernel (previously validated column layout) -- used only if the fused path
# fails the one-time capability probe on this compiler / chip.
# --------------------------------------------------------------------------------------
def _weighted_ce_cols_kernel(pred_ref, labels_ref, weights_ref, out_ref, acc_ref, *,
                             n_total):
    i = pl.program_id(0)

    @pl.when(i == 0)
    def _init():
        acc_ref[0, 0] = jnp.float32(0.0)

    pred = pred_ref[...].astype(jnp.float32)          # (T, C)
    tn, c = pred.shape
    labels = labels_ref[...]                          # (T, 1) i32
    w = weights_ref[...].astype(jnp.float32)          # (T, 1)

    rows = i * tn + lax.broadcasted_iota(jnp.int32, (tn, 1), 0)
    valid = rows < n_total
    cols = lax.broadcasted_iota(jnp.int32, (tn, c), 1)
    picked = jnp.sum(jnp.where(cols == labels, pred, 0.0), axis=-1, keepdims=True)
    m = jnp.max(pred, axis=-1, keepdims=True)
    lse = m + jnp.log(jnp.sum(jnp.exp(pred - m), axis=-1, keepdims=True))
    acc_ref[0, 0] += jnp.sum(jnp.where(valid, (lse - picked) * w, 0.0))

    @pl.when(i == pl.num_programs(0) - 1)
    def _finalize():
        out_ref[0, 0] = acc_ref[0, 0]


def _weighted_loss_columns(predictions, labels, weights, tile_n=None, _force_splits=None):
    del _force_splits
    n, c = predictions.shape
    labels_col = labels.reshape(n, 1).astype(jnp.int32)
    weights_col = weights.reshape(n, 1)

    c_lanes = _round_up(max(c, 1), _LANE)
    isz = predictions.dtype.itemsize
    per_row = 2 * (c_lanes * isz + 2 * _LANE * 4) + 3 * c_lanes * 4 + 3 * _LANE * 4
    if tile_n is None:
        tile = max(8, _round_down((24 * _MIB) // per_row, 8))
    else:
        tile = max(8, _round_down(int(tile_n), 8))
    if tile >= n:
        tile = n
    num_tiles = pl.cdiv(n, tile)

    total = pl.pallas_call(
        functools.partial(_weighted_ce_cols_kernel, n_total=n),
        out_shape=jax.ShapeDtypeStruct((1, 1), jnp.float32),
        grid_spec=pltpu.PrefetchScalarGridSpec(
            num_scalar_prefetch=0,
            grid=(num_tiles,),
            in_specs=[
                pl.BlockSpec((tile, c), lambda i: (i, 0)),
                pl.BlockSpec((tile, 1), lambda i: (i, 0)),
                pl.BlockSpec((tile, 1), lambda i: (i, 0)),
            ],
            out_specs=pl.BlockSpec((1, 1), lambda i: (0, 0),
                                   memory_space=pltpu.MemorySpace.SMEM),
            scratch_shapes=[pltpu.SMEM((1, 1), jnp.float32)],
        ),
        compiler_params=pltpu.CompilerParams(
            dimension_semantics=("arbitrary",),
            vmem_limit_bytes=40 * _MIB,
        ),
    )(predictions, labels_col, weights_col)
    return total[0, 0] / jnp.float32(n)


# --------------------------------------------------------------------------------------
# Public wrapper + reference
# --------------------------------------------------------------------------------------
def _reference(predictions, labels, weights):
    """Plain-JAX reference mirroring torch semantics."""
    logp = jax.nn.log_softmax(predictions.astype(jnp.float32), axis=-1)
    per_ex = -jnp.take_along_axis(logp, labels.reshape(-1, 1).astype(jnp.int32), axis=-1)[:, 0]
    return jnp.dot(per_ex, weights.reshape(-1).astype(jnp.float32)) / predictions.shape[0]


_FUSED_OK = None


def _fused_path_ok():
    """One-time probe: does the fused (MXU-trace) kernel lower & match on this chip?"""
    global _FUSED_OK
    if _FUSED_OK is None:
        try:
            kp, kl, kw = jax.random.split(jax.random.PRNGKey(1234), 3)
            p = jax.random.normal(kp, (48, 24), dtype=jnp.float32)
            l = jax.random.randint(kl, (48,), 0, 24, dtype=jnp.int32)
            w = jax.random.uniform(kw, (48,), dtype=jnp.float32)
            got = float(jax.block_until_ready(_weighted_loss_fused(p, l, w)))
            want = float(_reference(p, l, w))
            _FUSED_OK = abs(got - want) <= 1e-3 * max(1.0, abs(want))
        except Exception:  # pragma: no cover - lowering fallback
            _FUSED_OK = False
    return _FUSED_OK


def weighted_loss_fn(predictions, labels, weights, *, tile_n=None, _force_splits=None):
    """predictions: (N, C) float (f32/bf16); labels: (N,) int; weights: flattens to (N,)."""
    if _fused_path_ok():
        return _weighted_loss_fused(predictions, labels, weights, tile_n, _force_splits)
    return _weighted_loss_columns(predictions, labels, weights, tile_n, _force_splits)


if __name__ == "__main__":
    key = jax.random.PRNGKey(0)
    k_pred, k_lab, k_w = jax.random.split(key, 3)

    def _check(pred, lab, w, tol, **kw):
        out = jax.block_until_ready(weighted_loss_fn(pred, lab, w, **kw))
        ref = _reference(pred, lab, w)
        assert jnp.isfinite(out), out
        assert jnp.allclose(out, ref, rtol=tol, atol=tol), (out, ref)

    # Case 1: tiny batch, single full-extent tile, f32.
    N, C = 8, 32
    pred = jax.random.normal(k_pred, (N, C), dtype=jnp.float32)
    lab = jax.random.randint(k_lab, (N,), 0, C, dtype=jnp.int32)
    w = jax.random.uniform(k_w, (N,), dtype=jnp.float32)
    _check(pred, lab, w, 1e-4)

    # Case 2: multi-tile grid with a partial tail tile (N % tile != 0), small C, f32.
    N2, C2 = 300, 8
    pred2 = jax.random.normal(k_pred, (N2, C2), dtype=jnp.float32)
    lab2 = jax.random.randint(k_lab, (N2,), 0, C2, dtype=jnp.int32)
    w2 = jax.random.uniform(k_w, (N2,), dtype=jnp.float32)
    _check(pred2, lab2, w2, 1e-4, tile_n=128)

    # Case 3: forced 2-way split so the clamped duplicate-tile masking runs on any chip.
    _check(pred2, lab2, w2, 1e-4, tile_n=128, _force_splits=2)

    # Case 4: bf16 predictions (native-dtype max + in-kernel upcast) and 2-D weights.
    N3, C3 = 160, 32
    pred3 = jax.random.normal(k_pred, (N3, C3), dtype=jnp.float32).astype(jnp.bfloat16)
    lab3 = jax.random.randint(k_lab, (N3,), 0, C3, dtype=jnp.int32)
    w3 = jax.random.uniform(k_w, (N3, 1), dtype=jnp.float32)
    _check(pred3, lab3, w3, 1e-3)

    print("KERNEL_OK")
</pallas_src>

<mosaic_0001>
module attributes {stable_mosaic.version = 11 : i64} {
  func.func @_weighted_ce_fused_kernel(%arg0: i32, %arg1: i32, %arg2: memref<48x24xf32, #tpu.memory_space<vmem>>, %arg3: memref<1x48xi32, #tpu.memory_space<vmem>>, %arg4: memref<1x48xf32, #tpu.memory_space<vmem>>, %arg5: memref<1x1xf32, #tpu.memory_space<smem>>, %arg6: memref<1x1xf32, #tpu.memory_space<vmem>>) attributes {dimension_semantics = [#tpu.dimension_semantics<parallel>, #tpu.dimension_semantics<arbitrary>], iteration_bounds = array<i64: 1, 1>, scalar_prefetch = 0 : i64, scratch_operands = 1 : i64, tpu.core_type = #tpu.core_type<tc>, window_params = [{transform_indices = @transform_0, window_bounds = array<i64: 48, 24>}, {transform_indices = @transform_1, window_bounds = array<i64: 1, 48>}, {transform_indices = @transform_2, window_bounds = array<i64: 1, 48>}, {transform_indices = @transform_3, window_bounds = array<i64: 1, 1>}]} {
    %c0_i32 = arith.constant 0 : i32
    %0 = arith.cmpi eq, %arg1, %c0_i32 : i32
    %1 = arith.extui %0 : i1 to i32
    %c0_i32_0 = arith.constant 0 : i32
    %2 = arith.cmpi ne, %1, %c0_i32_0 : i32
    scf.if %2 {
      %cst_21 = arith.constant 0.000000e+00 : f32
      %58 = vector.broadcast %cst_21 : f32 to vector<1x1xf32>
      %c0_22 = arith.constant 0 : index
      %c0_23 = arith.constant 0 : index
      %59 = vector.load %arg6[%c0_22, %c0_23] : memref<1x1xf32, #tpu.memory_space<vmem>>, vector<1x1xf32>
      tpu.vector_store %arg6[%c0_22, %c0_23], %58 {strides = array<i32>} : memref<1x1xf32, #tpu.memory_space<vmem>>, vector<1x1xf32>,
    } else {
    }
    %c0 = arith.constant 0 : index
    %c0_1 = arith.constant 0 : index
    %3 = vector.load %arg2[%c0, %c0_1] : memref<48x24xf32, #tpu.memory_space<vmem>>, vector<48x24xf32>
    %c1_i32 = arith.constant 1 : i32
    %4 = arith.muli %arg0, %c1_i32 : i32
    %5 = arith.addi %4, %arg1 : i32
    %c48_i32 = arith.constant 48 : i32
    %6 = arith.muli %5, %c48_i32 : i32
    %7 = tpu.iota {dimensions = array<i32: 0>} : vector<48x24xi32>
    %8 = vector.broadcast %6 : i32 to vector<48x24xi32>
    %9 = arith.addi %8, %7 : vector<48x24xi32>
    %c48_i32_2 = arith.constant 48 : i32
    %10 = vector.broadcast %c48_i32_2 : i32 to vector<48x24xi32>
    %11 = arith.cmpi slt, %9, %10 : vector<48x24xi32>
    %12 = tpu.iota {dimensions = array<i32: 1>} : vector<1x48xi32>
    %13 = vector.broadcast %6 : i32 to vector<1x48xi32>
    %14 = arith.addi %13, %12 : vector<1x48xi32>
    %c48_i32_3 = arith.constant 48 : i32
    %15 = vector.broadcast %c48_i32_3 : i32 to vector<1x48xi32>
    %16 = arith.cmpi slt, %14, %15 : vector<1x48xi32>
    %cst = arith.constant 0.000000e+00 : f32
    %17 = vector.broadcast %cst : f32 to vector<48x24xf32>
    %18 = arith.select %11, %3, %17 : vector<48x24xi1>, vector<48x24xf32>
    %cst_4 = arith.constant dense<0xFF800000> : vector<48xf32>
    %19 = vector.multi_reduction <maximumf>, %18, %cst_4 [1] : vector<48x24xf32> to vector<48xf32>
    %20 = vector.shape_cast %19 : vector<48xf32> to vector<48x1xf32>
    %21 = vector.broadcast %20 : vector<48x1xf32> to vector<48x24xf32>
    %22 = arith.subf %18, %21 : vector<48x24xf32>
    %23 = math.exp %22 : vector<48x24xf32>
    %cst_5 = arith.constant dense<0.000000e+00> : vector<48xf32>
    %24 = vector.multi_reduction <add>, %23, %cst_5 [1] : vector<48x24xf32> to vector<48xf32>
    %25 = vector.shape_cast %24 : vector<48xf32> to vector<48x1xf32>
    %26 = math.log %25 : vector<48x1xf32>
    %27 = arith.addf %20, %26 : vector<48x1xf32>
    %28 = vector.broadcast %27 : vector<48x1xf32> to vector<48x24xf32>
    %29 = arith.subf %28, %18 : vector<48x24xf32>
    %c0_6 = arith.constant 0 : index
    %c0_7 = arith.constant 0 : index
    %30 = vector.load %arg4[%c0_6, %c0_7] : memref<1x48xf32, #tpu.memory_space<vmem>>, vector<1x48xf32>
    %cst_8 = arith.constant 0.000000e+00 : f32
    %31 = vector.broadcast %cst_8 : f32 to vector<1x48xf32>
    %32 = arith.select %16, %30, %31 : vector<1x48xi1>, vector<1x48xf32>
    %33 = tpu.iota {dimensions = array<i32: 0>} : vector<24x48xi32>
    %c0_9 = arith.constant 0 : index
    %c0_10 = arith.constant 0 : index
    %34 = vector.load %arg3[%c0_9, %c0_10] : memref<1x48xi32, #tpu.memory_space<vmem>>, vector<1x48xi32>
    %35 = vector.broadcast %34 : vector<1x48xi32> to vector<24x48xi32>
    %36 = arith.cmpi eq, %33, %35 : vector<24x48xi32>
    %cst_11 = arith.constant 0.000000e+00 : f32
    %37 = vector.shape_cast %32 : vector<1x48xf32> to vector<1x48xf32>
    %38 = vector.broadcast %37 : vector<1x48xf32> to vector<24x48xf32>
    %39 = vector.broadcast %cst_11 : f32 to vector<24x48xf32>
    %40 = arith.select %36, %38, %39 : vector<24x48xi1>, vector<24x48xf32>
    %cst_12 = arith.constant dense<0.000000e+00> : vector<24x24xf32>
    %41 = tpu.matmul %40, %29, %cst_12 {dimension_numbers = #tpu.dot_dimension_numbers<[1], [0], [0], [1], [0, 0, 1, 1], [], []>, precision = #tpu.contract_precision<fp32>} : vector<24x48xf32>, vector<48x24xf32>, vector<24x24xf32> -> vector<24x24xf32>
    %42 = tpu.iota {dimensions = array<i32: 0>} : vector<24x24xi32>
    %43 = tpu.iota {dimensions = array<i32: 1>} : vector<24x24xi32>
    %44 = arith.cmpi eq, %42, %43 : vector<24x24xi32>
    %c0_13 = arith.constant 0 : index
    %c0_14 = arith.constant 0 : index
    %45 = vector.load %arg6[%c0_13, %c0_14] : memref<1x1xf32, #tpu.memory_space<vmem>>, vector<1x1xf32>
    %cst_15 = arith.constant 0.000000e+00 : f32
    %46 = vector.broadcast %cst_15 : f32 to vector<24x24xf32>
    %47 = arith.select %44, %41, %46 : vector<24x24xi1>, vector<24x24xf32>
    %48 = vector.shape_cast %47 : vector<24x24xf32> to vector<1x24x24xf32>
    %cst_16 = arith.constant dense<0.000000e+00> : vector<1xf32>
    %49 = vector.multi_reduction <add>, %48, %cst_16 [1, 2] : vector<1x24x24xf32> to vector<1xf32>
    %50 = vector.shape_cast %49 : vector<1xf32> to vector<1x1x1xf32>
    %51 = vector.extract %50[0, 0, 0] : f32 from vector<1x1x1xf32>
    %52 = vector.broadcast %51 : f32 to vector<1x1xf32>
    %53 = arith.addf %45, %52 : vector<1x1xf32>
    %c0_17 = arith.constant 0 : index
    %c0_18 = arith.constant 0 : index
    %54 = vector.load %arg6[%c0_17, %c0_18] : memref<1x1xf32, #tpu.memory_space<vmem>>, vector<1x1xf32>
    tpu.vector_store %arg6[%c0_17, %c0_18], %53 {strides = array<i32>} : memref<1x1xf32, #tpu.memory_space<vmem>>, vector<1x1xf32>,
    %c0_i32_19 = arith.constant 0 : i32
    %55 = arith.cmpi eq, %arg1, %c0_i32_19 : i32
    %56 = arith.extui %55 : i1 to i32
    %c0_i32_20 = arith.constant 0 : i32
    %57 = arith.cmpi ne, %56, %c0_i32_20 : i32
    scf.if %57 {
      %c0_21 = arith.constant 0 : index
      %c0_22 = arith.constant 0 : index
      %58 = vector.load %arg6[%c0_21, %c0_22] : memref<1x1xf32, #tpu.memory_space<vmem>>, vector<1x1xf32>
      %59 = vector.extract %58[0, 0] : f32 from vector<1x1xf32>
      %c0_23 = arith.constant 0 : index
      %c0_24 = arith.constant 0 : index
      %60 = memref.load %arg5[%c0_23, %c0_24] : memref<1x1xf32, #tpu.memory_space<smem>>
      memref.store %59, %arg5[%c0_23, %c0_24] : memref<1x1xf32, #tpu.memory_space<smem>>
    } else {
    }
    return
  }
  func.func @transform_0(%arg0: i32, %arg1: i32) -> (i32, i32) {
    %c1_i32 = arith.constant 1 : i32
    %0 = arith.muli %arg0, %c1_i32 : i32
    %1 = arith.addi %0, %arg1 : i32
    %c0_i32 = arith.constant 0 : i32
    %2 = arith.minsi %1, %c0_i32 : i32
    %c0_i32_0 = arith.constant 0 : i32
    %c0_i32_1 = arith.constant 0 : i32
    return %2, %c0_i32_0 : i32, i32
  }
  func.func @transform_1(%arg0: i32, %arg1: i32) -> (i32, i32) {
    %c1_i32 = arith.constant 1 : i32
    %0 = arith.muli %arg0, %c1_i32 : i32
    %1 = arith.addi %0, %arg1 : i32
    %c0_i32 = arith.constant 0 : i32
    %2 = arith.minsi %1, %c0_i32 : i32
    %c0_i32_0 = arith.constant 0 : i32
    %c0_i32_1 = arith.constant 0 : i32
    return %c0_i32_0, %2 : i32, i32
  }
  func.func @transform_2(%arg0: i32, %arg1: i32) -> (i32, i32) {
    %c1_i32 = arith.constant 1 : i32
    %0 = arith.muli %arg0, %c1_i32 : i32
    %1 = arith.addi %0, %arg1 : i32
    %c0_i32 = arith.constant 0 : i32
    %2 = arith.minsi %1, %c0_i32 : i32
    %c0_i32_0 = arith.constant 0 : i32
    %c0_i32_1 = arith.constant 0 : i32
    return %c0_i32_0, %2 : i32, i32
  }
  func.func @transform_3(%arg0: i32, %arg1: i32) -> (i32, i32) {
    %c0_i32 = arith.constant 0 : i32
    %c0_i32_0 = arith.constant 0 : i32
    return %arg0, %c0_i32 : i32, i32
  }
}

module attributes {stable_mosaic.version = 11 : i64} {
  func.func @_weighted_ce_cols_kernel(%arg0: i32, %arg1: memref<8x32xf32, #tpu.memory_space<vmem>>, %arg2: memref<8x1xi32, #tpu.memory_space<vmem>>, %arg3: memref<8x1xf32, #tpu.memory_space<vmem>>, %arg4: memref<1x1xf32, #tpu.memory_space<smem>>, %arg5: memref<1x1xf32, #tpu.memory_space<smem>>) attributes {dimension_semantics = [#tpu.dimension_semantics<arbitrary>], iteration_bounds = array<i64: 1>, scalar_prefetch = 0 : i64, scratch_operands = 1 : i64, tpu.core_type = #tpu.core_type<tc>, window_params = [{transform_indices = @transform_0, window_bounds = array<i64: 8, 32>}, {transform_indices = @transform_1, window_bounds = array<i64: 8, 1>}, {transform_indices = @transform_2, window_bounds = array<i64: 8, 1>}, {transform_indices = @transform_3, window_bounds = array<i64: 1, 1>}]} {
    %c0_i32 = arith.constant 0 : i32
    %0 = arith.cmpi eq, %arg0, %c0_i32 : i32
    %1 = arith.extui %0 : i1 to i32
    %c0_i32_0 = arith.constant 0 : i32
    %2 = arith.cmpi ne, %1, %c0_i32_0 : i32
    scf.if %2 {
      %cst_18 = arith.constant 0.000000e+00 : f32
      %c0_19 = arith.constant 0 : index
      %c0_20 = arith.constant 0 : index
      %42 = memref.load %arg5[%c0_19, %c0_20] : memref<1x1xf32, #tpu.memory_space<smem>>
      memref.store %cst_18, %arg5[%c0_19, %c0_20] : memref<1x1xf32, #tpu.memory_space<smem>>
    } else {
    }
    %c0 = arith.constant 0 : index
    %c0_1 = arith.constant 0 : index
    %3 = vector.load %arg1[%c0, %c0_1] : memref<8x32xf32, #tpu.memory_space<vmem>>, vector<8x32xf32>
    %c0_2 = arith.constant 0 : index
    %c0_3 = arith.constant 0 : index
    %4 = vector.load %arg2[%c0_2, %c0_3] : memref<8x1xi32, #tpu.memory_space<vmem>>, vector<8x1xi32>
    %c0_4 = arith.constant 0 : index
    %c0_5 = arith.constant 0 : index
    %5 = vector.load %arg3[%c0_4, %c0_5] : memref<8x1xf32, #tpu.memory_space<vmem>>, vector<8x1xf32>
    %c8_i32 = arith.constant 8 : i32
    %6 = arith.muli %arg0, %c8_i32 : i32
    %7 = tpu.iota {dimensions = array<i32: 0>} : vector<8x1xi32>
    %8 = vector.broadcast %6 : i32 to vector<8x1xi32>
    %9 = arith.addi %8, %7 : vector<8x1xi32>
    %c8_i32_6 = arith.constant 8 : i32
    %10 = vector.broadcast %c8_i32_6 : i32 to vector<8x1xi32>
    %11 = arith.cmpi slt, %9, %10 : vector<8x1xi32>
    %12 = tpu.iota {dimensions = array<i32: 1>} : vector<8x32xi32>
    %13 = vector.broadcast %4 : vector<8x1xi32> to vector<8x32xi32>
    %14 = arith.cmpi eq, %12, %13 : vector<8x32xi32>
    %cst = arith.constant 0.000000e+00 : f32
    %15 = vector.broadcast %cst : f32 to vector<8x32xf32>
    %16 = arith.select %14, %3, %15 : vector<8x32xi1>, vector<8x32xf32>
    %cst_7 = arith.constant dense<0.000000e+00> : vector<8xf32>
    %17 = vector.multi_reduction <add>, %16, %cst_7 [1] : vector<8x32xf32> to vector<8xf32>
    %18 = vector.shape_cast %17 : vector<8xf32> to vector<8x1xf32>
    %cst_8 = arith.constant dense<0xFF800000> : vector<8xf32>
    %19 = vector.multi_reduction <maximumf>, %3, %cst_8 [1] : vector<8x32xf32> to vector<8xf32>
    %20 = vector.shape_cast %19 : vector<8xf32> to vector<8x1xf32>
    %21 = vector.broadcast %20 : vector<8x1xf32> to vector<8x32xf32>
    %22 = arith.subf %3, %21 : vector<8x32xf32>
    %23 = math.exp %22 : vector<8x32xf32>
    %cst_9 = arith.constant dense<0.000000e+00> : vector<8xf32>
    %24 = vector.multi_reduction <add>, %23, %cst_9 [1] : vector<8x32xf32> to vector<8xf32>
    %25 = vector.shape_cast %24 : vector<8xf32> to vector<8x1xf32>
    %26 = math.log %25 : vector<8x1xf32>
    %27 = arith.addf %20, %26 : vector<8x1xf32>
    %c0_10 = arith.constant 0 : index
    %c0_11 = arith.constant 0 : index
    %28 = memref.load %arg5[%c0_10, %c0_11] : memref<1x1xf32, #tpu.memory_space<smem>>
    %29 = arith.subf %27, %18 : vector<8x1xf32>
    %30 = arith.mulf %29, %5 : vector<8x1xf32>
    %cst_12 = arith.constant 0.000000e+00 : f32
    %31 = vector.broadcast %cst_12 : f32 to vector<8x1xf32>
    %32 = arith.select %11, %30, %31 : vector<8x1xi1>, vector<8x1xf32>
    %33 = vector.shape_cast %32 : vector<8x1xf32> to vector<1x8x1xf32>
    %cst_13 = arith.constant dense<0.000000e+00> : vector<1xf32>
    %34 = vector.multi_reduction <add>, %33, %cst_13 [1, 2] : vector<1x8x1xf32> to vector<1xf32>
    %35 = vector.shape_cast %34 : vector<1xf32> to vector<1x1x1xf32>
    %36 = vector.extract %35[0, 0, 0] : f32 from vector<1x1x1xf32>
    %37 = arith.addf %28, %36 : f32
    %c0_14 = arith.constant 0 : index
    %c0_15 = arith.constant 0 : index
    %38 = memref.load %arg5[%c0_14, %c0_15] : memref<1x1xf32, #tpu.memory_space<smem>>
    memref.store %37, %arg5[%c0_14, %c0_15] : memref<1x1xf32, #tpu.memory_space<smem>>
    %c0_i32_16 = arith.constant 0 : i32
    %39 = arith.cmpi eq, %arg0, %c0_i32_16 : i32
    %40 = arith.extui %39 : i1 to i32
    %c0_i32_17 = arith.constant 0 : i32
    %41 = arith.cmpi ne, %40, %c0_i32_17 : i32
    scf.if %41 {
      %c0_18 = arith.constant 0 : index
      %c0_19 = arith.constant 0 : index
      %42 = memref.load %arg5[%c0_18, %c0_19] : memref<1x1xf32, #tpu.memory_space<smem>>
      %c0_20 = arith.constant 0 : index
      %c0_21 = arith.constant 0 : index
      %43 = memref.load %arg4[%c0_20, %c0_21] : memref<1x1xf32, #tpu.memory_space<smem>>
      memref.store %42, %arg4[%c0_20, %c0_21] : memref<1x1xf32, #tpu.memory_space<smem>>
    } else {
    }
    return
  }
  func.func @transform_0(%arg0: i32) -> (i32, i32) {
    %c0_i32 = arith.constant 0 : i32
    %c0_i32_0 = arith.constant 0 : i32
    return %arg0, %c0_i32 : i32, i32
  }
  func.func @transform_1(%arg0: i32) -> (i32, i32) {
    %c0_i32 = arith.constant 0 : i32
    %c0_i32_0 = arith.constant 0 : i32
    return %arg0, %c0_i32 : i32, i32
  }
  func.func @transform_2(%arg0: i32) -> (i32, i32) {
    %c0_i32 = arith.constant 0 : i32
    %c0_i32_0 = arith.constant 0 : i32
    return %arg0, %c0_i32 : i32, i32
  }
  func.func @transform_3(%arg0: i32) -> (i32, i32) {
    %c0_i32 = arith.constant 0 : i32
    %c0_i32_0 = arith.constant 0 : i32
    %c0_i32_1 = arith.constant 0 : i32
    return %c0_i32, %c0_i32_0 : i32, i32
  }
}

</mosaic_0001>

<bundles_post_ra>
// kernel: tpu_custom_call.1
= control target key start
LH: loop header
LB: loop body
LE: loop exit
PB: predicated region body
PF: predicated region fallthrough
CT: control target
= control target key end

     0   :  { %vm139_vm0 = vcmask 195584   ;;  %s850_s0 = inlined_call_operand.vmem [shape: f32[48,24], index: 0, kind: input, shape index: {}]   ;;  %s851_s1 = inlined_call_operand.vmem [shape: s32[1,48], index: 1, kind: input, shape index: {}]   ;;  %s852_s2 = inlined_call_operand.vmem [shape: f32[1,48], index: 2, kind: input, shape index: {}]   ;;  %s853_s3 = inlined_call_operand.hbm [shape: f32[1,1], index: 3, kind: output, shape index: {}]  }
   0x1   :  { %v653_v0 = vld [vmem:[%s850_s0 + $0x28] sm:$0xff]  ;;  %v658_v1 = vld [vmem:[%s850_s0 + $0x18] sm:$0xff] }
   0x2   :  { %v663_v2 = vld [vmem:[%s850_s0 + $0x8] sm:$0xff]  ;;  %v155_v3 = vsel %vm139_vm0, %v653_v0, -inf  ;;  %v149_v4 = vsel %vm139_vm0, %v658_v1, -inf }
   0x3   :  { %v143_v5 = vsel %vm139_vm0, %v663_v2, -inf  ;;  %156 = vmax.xlane.f32.xlu0 %v155_v3  ;;  %150 = vmax.xlane.f32.xlu1 %v149_v4 }
   0x4   :  { %144 = vmax.xlane.f32.xlu2 %v143_v5 }
   0x5   :  { %8 = vsyncpa [#allocation4], 0  ;;  %v674_v6 = vld [vmem:[%s850_s0 + $0x20] sm:$0xff]  ;;  %v679_v7 = vld [vmem:[%s850_s0 + $0x10] sm:$0xff]  ;;  %v109_v42 = vlaneseq  ;;  %vm229_vm4 = vcmask 392192   ;;  %vm99_vm9 = vcmask 0  }
   0x6   :  { %v684_v8 = vld [vmem:[%s850_s0] sm:$0xff]  ;;  %v152_v9 = vsel %vm139_vm0, %v674_v6, -inf  ;;  %v146_v10 = vsel %vm139_vm0, %v679_v7, -inf  ;;  %s549_s28 = sshll.u32 %s853_s3, 4  ;;  %s629_s30 = smov [#allocation3]   ;;  %s550_s28 = int_to_ptr.hbm [resolvable:$true] %s549_s28 }
   0x7   :  { %v140_v11 = vsel %vm139_vm0, %v684_v8, -inf  ;;  %v719_v43 = vand.u32 127, %v109_v42  ;;  %v721_v46 = vshrl.u32 %v109_v42, 7  ;;  %v218_v47 = vld [vmem:[%s852_s2] sm:$0x1] }
   0x8   :  { %v589_v50 = vld [vmem:[%s851_s1] ss:$0 sm:$0xff] }
   0x9   :  { %vm132_vm1 = vcmp.lt.s32.totalorder %v719_v43, 48  ;;  %v728_v48 = vadd.s32 16, %v721_v46  ;;  %vm222_vm3 = vcmp.eq.s32.totalorder %v721_v46, %v589_v50  ;;  %vm512_vm7 = vcmp.eq.s32.totalorder %v721_v46, %v719_v43 }
   0xa   :  { %v219_v49 = vsel %vm132_vm1, %v218_v47, 0.0 }
   0xb   :  { %153 = vmax.xlane.f32.xlu0 %v152_v9  ;;  %147 = vmax.xlane.f32.xlu1 %v146_v10  ;;  %v225_v57 = vperm.slane %v219_v49, 0  ;;  %vm224_vm2 = vcmp.eq.s32.totalorder %v728_v48, %v589_v50  ;;  %vm514_vm8 = vcmp.eq.s32.totalorder %v728_v48, %v719_v43 }
   0xc   :  { %141 = vmax.xlane.f32.xlu2 %v140_v11 }
   0xd   :  { %v228_v63 = vsel %vm224_vm2, %v225_v57, 0.0  ;;  %v226_v3 = vsel %vm222_vm3, %v225_v57, 0.0 }
  0x76   :  { %v157_v12 = vpop.xlane.xlu0 %156  ;;  %v692_v13 = vpop.xlane.xlu1 %150 }
  0x77   :  { %v163_v14 = vsub.f32 %v653_v0, %v157_v12  ;;  %v161_v15 = vsub.f32 %v658_v1, %v692_v13  ;;  %v697_v16 = vpop.xlane.xlu2 %144 }
  0x78   :  { %v159_v26 = vsub.f32 %v663_v2, %v697_v16 }
  0x79   :  { %v174_v17 = vmul.f32 1.442695, %v163_v14  ;;  %v170_v18 = vmul.f32 1.442695, %v161_v15 }
  0x7a   :  { %v166_v33 = vmul.f32 1.442695, %v159_v26 }
  0x7b   :  { %590 = vpow2.f32 %v174_v17  ;;  %v750_v17 = vadd.s32 8, %v721_v46 }
  0x7c   :  { %592 = vpow2.f32 %v170_v18 }
  0x7d   :  { %vm223_vm5 = vcmp.eq.s32.totalorder %v750_v17, %v589_v50  ;;  %vm513_vm6 = vcmp.eq.s32.totalorder %v750_v17, %v719_v43 }
  0x7e   :  { %v699_v19 = vpop.xlane.xlu0 %153  ;;  %v701_v20 = vpop.xlane.xlu1 %147 }
  0x7f   :  { %v162_v21 = vsub.f32 %v674_v6, %v699_v19  ;;  %v160_v22 = vsub.f32 %v679_v7, %v701_v20  ;;  %v707_v23 = vpop.xlane.xlu2 %141 }
  0x80   :  { %v158_v24 = vsub.f32 %v684_v8, %v707_v23 }
  0x81   :  { %v591_v25 = vpop.eup %590  ;;  %v172_v27 = vmul.f32 1.442695, %v162_v21  ;;  %v168_v28 = vmul.f32 1.442695, %v160_v22 }
  0x82   :  { %v593_v29 = vpop.eup %592  ;;  %v164_v30 = vmul.f32 1.442695, %v158_v24  ;;  %v191_v31 = vsel %vm139_vm0, %v591_v25, 0.0 }
  0x83   :  { %594 = vpow2.f32 %v172_v27  ;;  %192 = vadd.xlane.f32.xlu0 %v191_v31  ;;  %v185_v32 = vsel %vm139_vm0, %v593_v29, 0.0 }
  0x84   :  { %596 = vpow2.f32 %v168_v28  ;;  %186 = vadd.xlane.f32.xlu2 %v185_v32 }
  0x85   :  { %598 = vpow2.f32 %v164_v30 }
  0x86   :  { %600 = vpow2.f32 %v166_v33 }
  0x89   :  { %v595_v34 = vpop.eup %594 }
  0x8a   :  { %v597_v35 = vpop.eup %596  ;;  %v188_v36 = vsel %vm139_vm0, %v595_v34, 0.0 }
  0x8b   :  { %v599_v37 = vpop.eup %598  ;;  %189 = vadd.xlane.f32.xlu1 %v188_v36  ;;  %v182_v38 = vsel %vm139_vm0, %v597_v35, 0.0  ;;  %v227_v36 = vsel %vm223_vm5, %v225_v57, 0.0 }
  0x8c   :  { %183 = vadd.xlane.f32.xlu0 %v182_v38  ;;  %v176_v39 = vsel %vm139_vm0, %v599_v37, 0.0  ;;  %v601_v40 = vpop.eup %600 }
  0x8d   :  { %177 = vadd.xlane.f32.xlu2 %v176_v39  ;;  %v179_v41 = vsel %vm139_vm0, %v601_v40, 0.0 }
  0x93   :  { %180 = vadd.xlane.f32.xlu1 %v179_v41 }
  0xf6   :  { %v193_v44 = vpop.xlane.xlu0 %192 }
  0xf7   :  { %602 = vlog2.f32 %v193_v44  ;;  %v187_v45 = vpop.xlane.xlu2 %186 }
  0xf8   :  { %604 = vlog2.f32 %v187_v45  ;;  %v234_v45 = vsel %vm229_vm4, %v227_v36, 0 }
  0xfd   :  { %v603_v51 = vpop.eup %602 }
  0xfe   :  { %v605_v52 = vpop.eup %604  ;;  %v205_v53 = vmul.f32 0.6931472, %v603_v51  ;;  %v190_v54 = vpop.xlane.xlu1 %189 }
  0xff   :  { %v201_v55 = vmul.f32 0.6931472, %v605_v52  ;;  %v184_v56 = vpop.xlane.xlu0 %183  ;;  %606 = vlog2.f32 %v190_v54 }
 0x100   :  { %v211_v58 = vadd.f32 %v205_v53, %v157_v12  ;;  %608 = vlog2.f32 %v184_v56  ;;  %v178_v59 = vpop.xlane.xlu2 %177  ;;  %v798_v53 = vand.u32 4294901760, %v234_v45 }
 0x101   :  { %v209_v60 = vadd.f32 %v201_v55, %v692_v13  ;;  %610 = vlog2.f32 %v178_v59 }
 0x102   :  { %v217_v61 = vsub.f32 %v211_v58, %v653_v0  ;;  %v237_v0 = vsel %vm229_vm4, %v228_v63, 0 }
 0x103   :  { %v215_v62 = vsub.f32 %v209_v60, %v658_v1  ;;  %v231_v1 = vsel %vm229_vm4, %v226_v3, 0  ;;  %v755_v25 = vand.u32 4294901760, %v237_v0  ;;  %v270_v60 = vsub.f32 %v234_v45, %v798_v53 }
 0x104   :  { %v738_v4 = vand.u32 4294901760, %v217_v61  ;;  %v757_v26 = vand.u32 4294901760, %v231_v1 }
 0x105   :  { %v607_v5 = vpop.eup %606  ;;  %v747_v14 = vand.u32 4294901760, %v215_v62 }
 0x106   :  { %v609_v9 = vpop.eup %608  ;;  %v203_v10 = vmul.f32 0.6931472, %v607_v5  ;;  %250 = vmatpush.msra.mxu0 %v738_v4  ;;  %571 = vmatpush.msra.mxu2 %v738_v4  ;;  %v181_v11 = vpop.xlane.xlu1 %180  ;;  %v743_v12 = vsub.f32 %v217_v61, %v738_v4  ;;  %v778_v34 = vsub.f32 %v231_v1, %v757_v26 }
 0x107   :  { %v611_v13 = vpop.eup %610  ;;  %v199_v15 = vmul.f32 0.6931472, %v609_v9  ;;  %612 = vlog2.f32 %v181_v11 }
 0x108   :  { %v210_v18 = vadd.f32 %v203_v10, %v699_v19  ;;  %v195_v21 = vmul.f32 0.6931472, %v611_v13  ;;  %v298_v22 = vand.u32 4294901760, %v743_v12  ;;  %v766_v19 = vsub.f32 %v215_v62, %v747_v14 }
 0x109   :  { %v208_v24 = vadd.f32 %v199_v15, %v701_v20  ;;  %v263_v44 = vand.u32 4294901760, %v778_v34  ;;  %v271_v10 = vand.u32 4294901760, %v270_v60 }
 0x10a   :  { %v216_v27 = vsub.f32 %v210_v18, %v674_v6  ;;  %v206_v28 = vadd.f32 %v195_v21, %v707_v23  ;;  %v299_v29 = vsub.f32 %v743_v12, %v298_v22  ;;  %v775_v23 = vsub.f32 %v237_v0, %v755_v25 }
 0x10b   :  { %v214_v30 = vsub.f32 %v208_v24, %v679_v7 }
 0x10c   :  { %v769_v20 = vand.u32 4294901760, %v216_v27  ;;  %v212_v31 = vsub.f32 %v206_v28, %v684_v8  ;;  %v300_v32 = vand.u32 4294901760, %v299_v29  ;;  %v310_v8 = vand.u32 4294901760, %v766_v19 }
 0x10d   :  { %v613_v33 = vpop.eup %612  ;;  %v772_v6 = vand.u32 4294901760, %v214_v30  ;;  %v279_v42 = vand.u32 4294901760, %v775_v23 }
 0x10e   :  { %v197_v7 = vmul.f32 0.6931472, %v613_v33  ;;  %252 = vmatpush.msra.mxu0 %v769_v20  ;;  %572 = vmatpush.msra.mxu2 %v769_v20  ;;  %v303_v35 = vsub.f32 %v216_v27, %v769_v20  ;;  %v783_v37 = vand.u32 4294901760, %v212_v31 }
 0x10f   :  { %301 = vmatpush.msra.mxu1 %v300_v32  ;;  %577 = vmatpush.msra.mxu3 %v300_v32  ;;  %v315_v38 = vsub.f32 %v214_v30, %v772_v6  ;;  %v280_v55 = vsub.f32 %v775_v23, %v279_v42 }
 0x110   :  { %v207_v39 = vadd.f32 %v197_v7, %v697_v16  ;;  %254 = vmatpush.msra.mxu0 %v747_v14  ;;  %573 = vmatpush.msra.mxu2 %v747_v14  ;;  %v304_v40 = vand.u32 4294901760, %v303_v35  ;;  %v311_v16 = vsub.f32 %v766_v19, %v310_v8  ;;  %v327_v50 = vsub.f32 %v212_v31, %v783_v37 }
 0x111   :  { %v316_v41 = vand.u32 4294901760, %v315_v38  ;;  %v281_v62 = vand.u32 4294901760, %v280_v55 }
 0x112   :  { %v213_v47 = vsub.f32 %v207_v39, %v663_v2  ;;  %256 = vmatpush.msra.mxu0 %v772_v6  ;;  %574 = vmatpush.msra.mxu2 %v772_v6  ;;  %v305_v49 = vsub.f32 %v303_v35, %v304_v40  ;;  %v264_v2 = vsub.f32 %v778_v34, %v263_v44  ;;  %v312_v57 = vand.u32 4294901760, %v311_v16 }
 0x113   :  { %v317_v54 = vsub.f32 %v315_v38, %v316_v41  ;;  %v328_v58 = vand.u32 4294901760, %v327_v50 }
 0x114   :  { %v257_v51 = vand.u32 4294901760, %v213_v47  ;;  %v306_v52 = vand.u32 4294901760, %v305_v49  ;;  %v265_v63 = vand.u32 4294901760, %v264_v2 }
 0x115   :  { %v318_v61 = vand.u32 4294901760, %v317_v54  ;;  %v329_v5 = vsub.f32 %v327_v50, %v328_v58 }
 0x116   :  { %258 = vmatpush.msra.mxu0 %v257_v51  ;;  %575 = vmatpush.msra.mxu2 %v257_v51  ;;  %v321_v56 = vsub.f32 %v213_v47, %v257_v51 }
 0x117   :  { %307 = vmatpush.msra.mxu1 %v306_v52  ;;  %578 = vmatpush.msra.mxu3 %v306_v52  ;;  %v330_v11 = vand.u32 4294901760, %v329_v5 }
 0x118   :  { %260 = vmatpush.msra.mxu0 %v783_v37  ;;  %576 = vmatpush.msra.mxu2 %v783_v37  ;;  %v322_v59 = vand.u32 4294901760, %v321_v56 }
 0x119   :  { %313 = vmatpush.msra.mxu1 %v312_v57  ;;  %579 = vmatpush.msra.mxu3 %v312_v57 }
 0x11a   :  { %357 = vmatpush.msrb.mxu2 %v743_v12  ;;  %443 = vmatpush.msrb.mxu0 %v298_v22  ;;  %v323_v3 = vsub.f32 %v321_v56, %v322_v59  ;;  %v272_v12 = vsub.f32 %v270_v60, %v271_v10 }
 0x11b   :  { %319 = vmatpush.msra.mxu1 %v318_v61  ;;  %580 = vmatpush.msra.mxu3 %v318_v61 }
 0x11c   :  { %360 = vmatpush.msrb.mxu2 %v303_v35  ;;  %447 = vmatpush.msrb.mxu0 %v304_v40  ;;  %v324_v9 = vand.u32 4294901760, %v323_v3  ;;  %v273_v0 = vand.u32 4294901760, %v272_v12 }
 0x11d   :  { %282 = vmatmul.f32.vlgmr.msra.gmra.mxu2 %v281_v62  ;;  %266 = vmatmul.f32.vlgmr.msra.gmra.mxu0 %v265_v63 }
 0x11e   :  { %363 = vmatpush.msrb.mxu2 %v766_v19  ;;  %451 = vmatpush.msrb.mxu0 %v310_v8 }
 0x11f   :  { %325 = vmatpush.msra.mxu1 %v324_v9  ;;  %581 = vmatpush.msra.mxu3 %v324_v9 }
 0x120   :  { %366 = vmatpush.msrb.mxu2 %v315_v38  ;;  %455 = vmatpush.msrb.mxu0 %v316_v41 }
 0x121   :  { %331 = vmatpush.msra.mxu1 %v330_v11  ;;  %582 = vmatpush.msra.mxu3 %v330_v11 }
 0x122   :  { %369 = vmatpush.msrb.mxu2 %v321_v56  ;;  %459 = vmatpush.msrb.mxu0 %v322_v59 }
 0x123   :  { %400 = vmatpush.msrb.mxu3 %v738_v4  ;;  %488 = vmatpush.msrb.mxu1 %v738_v4 }
 0x124   :  { %341 = vmatmul.f32.vlgmr.msra.gmra.mxu3 %v755_v25  ;;  %372 = vmatpush.msrb.mxu2 %v327_v50 }
 0x125   :  { %402 = vmatpush.msrb.mxu3 %v769_v20  ;;  %463 = vmatpush.msrb.mxu0 %v328_v58 }
 0x126   :  { %490 = vmatpush.msrb.mxu1 %v769_v20  ;;  %375 = vmatmul.f32.vlgmr.msrb.gmra.mxu2 %v778_v34 }
 0x127   :  { %333 = vmatmul.f32.vlgmr.msra.gmra.mxu1 %v757_v26  ;;  %404 = vmatpush.msrb.mxu3 %v747_v14 }
 0x128   :  { %492 = vmatpush.msrb.mxu1 %v747_v14  ;;  %274 = vmatmul.f32.gmra.mxu0 %v273_v0 }
 0x129   :  { %406 = vmatpush.msrb.mxu3 %v772_v6 }
 0x12a   :  { %494 = vmatpush.msrb.mxu1 %v772_v6 }
 0x12b   :  { %408 = vmatpush.msrb.mxu3 %v257_v51 }
 0x12c   :  { %496 = vmatpush.msrb.mxu1 %v257_v51  ;;  %v628_v51 = vmov 0.0  }
 0x12d   :  { %410 = vmatpush.msrb.mxu3 %v783_v37  ;;  %100 = vst.msk [vmem:[#allocation2] sm:$0x1] %vm99_vm9, %v628_v51 }
 0x12e   :  { %498 = vmatpush.msrb.mxu1 %v783_v37  ;;  %380 = vmatmul.f32.gmra.mxu2 %v270_v60 }
 0x12f   :  { %337 = vmatmul.f32.gmra.mxu1 %v798_v53  ;;  %414 = vmatmul.f32.vlgmr.msrb.gmra.mxu3 %v263_v44 }
 0x130   :  { %465 = vmatmul.f32.vlgmr.msrb.gmra.mxu0 %v757_v26 }
 0x134   :  { %v515_v43 = vld [vmem:[#allocation2] sm:$0x1] }
 0x136   :  { %385 = vmatmul.f32.gmra.mxu2 %v775_v23 }
 0x137   :  { %420 = vmatmul.f32.gmra.mxu3 %v271_v10  ;;  %500 = vmatmul.f32.vlgmr.msrb.gmra.mxu1 %v757_v26 }
 0x138   :  { %469 = vmatmul.f32.gmra.mxu0 %v798_v53 }
 0x13f   :  { %426 = vmatmul.f32.gmra.mxu3 %v279_v42  ;;  %504 = vmatmul.f32.gmra.mxu1 %v798_v53 }
 0x140   :  { %473 = vmatmul.f32.gmra.mxu0 %v755_v25 }
 0x147   :  { %508 = vmatmul.f32.gmra.mxu1 %v755_v25 }
 0x19a   :  { %v267_v4 = vpop.f32.mrf.mxu0 }
 0x1a0   :  { %v283_v1 = vpop.f32.mrf.mxu2 }
 0x1a4   :  { %v334_v13 = vpop.f32.mrf.mxu1 }
 0x1a5   :  { %v275_v14 = vpop.f32.mrf.mxu0  ;;  %v335_v28 = vadd.f32 %v334_v13, %v267_v4 }
 0x1a7   :  { %v342_v15 = vpop.f32.mrf.mxu3 }
 0x1a8   :  { %v343_v7 = vadd.f32 %v342_v15, %v283_v1 }
 0x1a9   :  { %v376_v18 = vpop.f32.mrf.mxu2 }
 0x1aa   :  { %v377_v29 = vadd.f32 %v376_v18, %v335_v28 }
 0x1ac   :  { %v338_v21 = vpop.f32.mrf.mxu1 }
 0x1ad   :  { %v466_v22 = vpop.f32.mrf.mxu0  ;;  %v339_v30 = vadd.f32 %v338_v21, %v275_v14 }
 0x1b1   :  { %v381_v26 = vpop.f32.mrf.mxu2 }
 0x1b2   :  { %v415_v24 = vpop.f32.mrf.mxu3  ;;  %v382_v20 = vadd.f32 %v381_v26, %v339_v30 }
 0x1b3   :  { %v416_v31 = vadd.f32 %v415_v24, %v377_v29 }
 0x1b4   :  { %v501_v27 = vpop.f32.mrf.mxu1 }
 0x1b5   :  { %v470_v19 = vpop.f32.mrf.mxu0  ;;  %v467_v6 = vadd.f32 %v466_v22, %v416_v31 }
 0x1b7   :  { %v502_v36 = vadd.f32 %v501_v27, %v467_v6 }
 0x1b9   :  { %v386_v34 = vpop.f32.mrf.mxu2  ;;  %v516_v42 = vsel %vm512_vm7, %v502_v36, 0.0 }
 0x1ba   :  { %v421_v32 = vpop.f32.mrf.mxu3  ;;  %v387_v37 = vadd.f32 %v386_v34, %v343_v7  ;;  %v519_v17 = vsel %vm139_vm0, %v516_v42, 0.0 }
 0x1bb   :  { %v422_v33 = vadd.f32 %v421_v32, %v382_v20 }
 0x1bc   :  { %v505_v25 = vpop.f32.mrf.mxu1 }
 0x1bd   :  { %v471_v23 = vadd.f32 %v470_v19, %v422_v33  ;;  %v474_v38 = vpop.f32.mrf.mxu0 }
 0x1bf   :  { %v506_v35 = vadd.f32 %v505_v25, %v471_v23 }
 0x1c1   :  { %v517_v39 = vsel %vm513_vm6, %v506_v35, 0.0 }
 0x1c2   :  { %v427_v8 = vpop.f32.mrf.mxu3  ;;  %v520_v45 = vsel %vm139_vm0, %v517_v39, 0.0 }
 0x1c3   :  { %v428_v40 = vadd.f32 %v427_v8, %v387_v37  ;;  %v521_v16 = vadd.f32 %v520_v45, %v519_v17 }
 0x1c4   :  { %v509_v41 = vpop.f32.mrf.mxu1 }
 0x1c5   :  { %v475_v44 = vadd.f32 %v474_v38, %v428_v40 }
 0x1c7   :  { %v510_v47 = vadd.f32 %v509_v41, %v475_v44 }
 0x1c9   :  { %v518_v49 = vsel %vm514_vm8, %v510_v47, 0.0 }
 0x1ca   :  { %v522_v50 = vsel %vm139_vm0, %v518_v49, 0.0 }
 0x1cb   :  { %v523_v46 = vadd.f32 %v522_v50, %v521_v16 }
 0x1cd   :  { %524 = vadd.xlane.f32.xlu0 %v523_v46 }
 0x240   :  { %v525_v52 = vpop.xlane.xlu0 %524 }
 0x241   :  { %v526_v53 = vrot.slane %v525_v52, 4 }
 0x243   :  { %v527_v54 = vadd.f32 %v526_v53, %v525_v52 }
 0x245   :  { %v528_v55 = vrot.slane %v527_v54, 2 }
 0x247   :  { %v529_v2 = vadd.f32 %v528_v55, %v527_v54 }
 0x249   :  { %v530_v56 = vrot.slane %v529_v2, 1 }
 0x24b   :  { %v531_v57 = vadd.f32 %v530_v56, %v529_v2 }
 0x24d   :  { %583 = vpush %v531_v57 }
 0x27e   :  { %s584_s1 = spop %583 }
 0x27f   :  { %v533_v48 = vstv %s584_s1 }
 0x280   :  { %v534_v58 = vadd.f32 %v533_v48, %v515_v43 }
 0x282   :  { %536 = vst.msk [vmem:[#allocation2] sm:$0x1] %vm99_vm9, %v534_v58 }
 0x289   :  { %v540_v59 = vld [vmem:[#allocation2] sm:$0x1] }
 0x28a   :  { %585 = vpush %v540_v59 }
 0x2bb   :  { %s586_s29 = spop %585 }
 0x2bc   :  { %543 = sst [smem:[#allocation3]] %s586_s29 }
 0x2bd   :  { %552 = dma.smem_to_hbm %s629_s30, 16, %s550_s28, [#allocation4]  }
 0x2be   :  { %626 = dma.done.wait [#allocation4], 16  }
 0x2bf   :  { %627 = vsyncadd [#allocation4], 4294967280 }
 0x2c0   :  { %557 = sfence }
 0x2c1   :  { %558 = vsyncpa [#allocation4], 1 }

// kernel: tpu_custom_call.1
= control target key start
LH: loop header
LB: loop body
LE: loop exit
PB: predicated region body
PF: predicated region fallthrough
CT: control target
= control target key end

     0   :  { %vm37_vm0 = vcmask 261120   ;;  %s152_s0 = inlined_call_operand.vmem [shape: f32[8,32], index: 0, kind: input, shape index: {}]   ;;  %s153_s1 = inlined_call_operand.vmem [shape: s32[8,1], index: 1, kind: input, shape index: {}]   ;;  %s154_s2 = inlined_call_operand.vmem [shape: f32[8,1], index: 2, kind: input, shape index: {}]   ;;  %s155_s3 = inlined_call_operand.hbm [shape: f32[1,1], index: 3, kind: output, shape index: {}]  }
   0x1   :  { %v21_v0 = vld [vmem:[%s152_s0] sm:$0xff] }
   0x2   :  { %8 = vsyncpa [#allocation4], 0  ;;  %v41_v1 = vsel %vm37_vm0, %v21_v0, -inf  ;;  %v115_v2 = vmov 0   ;;  %v22_v3 = vld [vmem:[%s153_s1] sm:$0xff]  ;;  %v30_v9 = vlaneseq  ;;  %vm57_vm2 = vcmask 7168  }
   0x3   :  { %96 = vset.pattern.permute.xlu0 %v115_v2  ;;  %v23_v19 = vld [vmem:[%s154_s2] sm:$0xff]  ;;  %s82_s18 = sshll.u32 %s155_s3, 4  ;;  %s116_s2 = smov [#allocation3]   ;;  %s83_s18 = int_to_ptr.hbm [resolvable:$true] %s82_s18 }
   0x4   :  { %42 = vmax.xlane.f32.xlu0 %v41_v1  ;;  %v31_v10 = vand.u32 127, %v30_v9 }
  0x18   :  { %33 = vperm.xlu0 %96, %v22_v3  }
  0x77   :  { %v43_v4 = vpop.xlane.xlu0 %42 }
  0x78   :  { %v44_v5 = vsub.f32 %v21_v0, %v43_v4 }
  0x7a   :  { %v45_v6 = vmul.f32 1.442695, %v44_v5 }
  0x7c   :  { %97 = vpow2.f32 %v45_v6 }
  0x82   :  { %v98_v7 = vpop.eup %97 }
  0x83   :  { %v47_v8 = vsel %vm37_vm0, %v98_v7, 0.0 }
  0x84   :  { %48 = vadd.xlane.f32.xlu1 %v47_v8 }
  0x8a   :  { %v34_v11 = vpop.permute.xlu0 %33 }
  0x8b   :  { %vm35_vm1 = vcmp.eq.s32.totalorder %v31_v10, %v34_v11 }
  0x8c   :  { %v36_v12 = vsel %vm35_vm1, %v21_v0, 0.0 }
  0x8d   :  { %v38_v13 = vsel %vm37_vm0, %v36_v12, 0.0 }
  0x8e   :  { %39 = vadd.xlane.f32.xlu1 %v38_v13 }
  0xf7   :  { %v49_v14 = vpop.xlane.xlu1 %48 }
  0xf8   :  { %99 = vlog2.f32 %v49_v14 }
  0xfe   :  { %v100_v15 = vpop.eup %99 }
  0xff   :  { %v51_v16 = vmul.f32 0.6931472, %v100_v15 }
 0x101   :  { %v52_v17 = vadd.f32 %v51_v16, %v43_v4  ;;  %v40_v18 = vpop.xlane.xlu1 %39 }
 0x103   :  { %v54_v20 = vsub.f32 %v52_v17, %v40_v18 }
 0x105   :  { %v55_v21 = vmul.f32 %v54_v20, %v23_v19 }
 0x107   :  { %v58_v22 = vsel %vm57_vm2, %v55_v21, 0.0 }
 0x108   :  { %59 = vadd.xlane.f32.xlu2 %v58_v22 }
 0x17b   :  { %v60_v23 = vpop.xlane.xlu2 %59 }
 0x17c   :  { %v61_v24 = vrot.slane %v60_v23, 4 }
 0x17e   :  { %v62_v25 = vadd.f32 %v61_v24, %v60_v23 }
 0x180   :  { %v63_v26 = vrot.slane %v62_v25, 2 }
 0x182   :  { %v64_v27 = vadd.f32 %v63_v26, %v62_v25 }
 0x184   :  { %v65_v28 = vrot.slane %v64_v27, 1 }
 0x186   :  { %v66_v29 = vadd.f32 %v65_v28, %v64_v27 }
 0x188   :  { %92 = vpush %v66_v29 }
 0x1b9   :  { %s93_s19 = spop %92 }
 0x1ba   :  { %76 = sst [smem:[#allocation3]] %s93_s19 }
 0x1bb   :  { %85 = dma.smem_to_hbm %s116_s2, 16, %s83_s18, [#allocation4]  }
 0x1bc   :  { %113 = dma.done.wait [#allocation4], 16  }
 0x1bd   :  { %114 = vsyncadd [#allocation4], 4294967280 }
 0x1be   :  { %90 = sfence }
 0x1bf   :  { %91 = vsyncpa [#allocation4], 1 }

</bundles_post_ra>
